<compile_context>
chip_gen: v7x
topology: tpu7x:2x2x1
jax: 0.10.0
libtpu: 0.0.40
codegen_flags: <defaults>
</compile_context>

<pallas_src>
import math
import functools

import jax
import jax.numpy as jnp
from jax import lax
from jax.experimental import pallas as pl
from jax.experimental.pallas import tpu as pltpu


# ----------------------------- Pallas kernels -----------------------------

def _matmul_bias_kernel(a_ref, w_ref, b_ref, o_ref):
    o_ref[...] = (jnp.dot(a_ref[...], w_ref[...], preferred_element_type=jnp.float32)
                  + b_ref[...])


def matmul_bias(a, w, b):
    """(M, K) @ (K, N) + (N,), row-tiled so DMA pipelines with the MXU (Align conv path)."""
    M, K = a.shape
    Nc = w.shape[1]
    bm = M
    if M > 512:
        for cand in (512, 256, 128):
            if M % cand == 0:
                bm = cand
                break
    b2 = jnp.reshape(b, (1, Nc)).astype(jnp.float32)
    return pl.pallas_call(
        _matmul_bias_kernel,
        out_shape=jax.ShapeDtypeStruct((M, Nc), jnp.float32),
        grid=(M // bm,),
        in_specs=[pl.BlockSpec((bm, K), lambda i: (i, 0)),
                  pl.BlockSpec((K, Nc), lambda i: (0, 0)),
                  pl.BlockSpec((1, Nc), lambda i: (0, 0))],
        out_specs=pl.BlockSpec((bm, Nc), lambda i: (i, 0)),
        compiler_params=pltpu.CompilerParams(dimension_semantics=("parallel",)),
    )(a.astype(jnp.float32), w.astype(jnp.float32), b2)


def _cheb_kernel(l_ref, x_ref, o_ref, *, Ks):
    lm = l_ref[...]
    x0 = x_ref[...]
    o_ref[0] = x0
    if Ks >= 2:
        x1 = jnp.dot(lm, x0, preferred_element_type=jnp.float32)
        o_ref[1] = x1
        xkm2, xkm1 = x0, x1
        for kk in range(2, Ks):
            xk = 2.0 * jnp.dot(lm, xkm1, preferred_element_type=jnp.float32) - xkm2
            o_ref[kk] = xk
            xkm2, xkm1 = xkm1, xk


def cheb_stack(L, x, Ks):
    """Chebyshev recursion T_k(L) x, k = 0..Ks-1.  Output [Ks, N, M], column (M) tiled."""
    N, M = x.shape
    Mt = M
    if M > 1024:                      # keep L resident, pipeline column tiles (v7x: 64 MiB VMEM)
        for cand in (1024, 512, 256, 128):
            if M % cand == 0:
                Mt = cand
                break
    return pl.pallas_call(
        functools.partial(_cheb_kernel, Ks=Ks),
        out_shape=jax.ShapeDtypeStruct((Ks, N, M), jnp.float32),
        grid=(M // Mt,),
        in_specs=[pl.BlockSpec((N, N), lambda j: (0, 0)),
                  pl.BlockSpec((N, Mt), lambda j: (0, j))],
        out_specs=pl.BlockSpec((Ks, N, Mt), lambda j: (0, 0, j)),
        compiler_params=pltpu.CompilerParams(dimension_semantics=("parallel",)),
    )(L.astype(jnp.float32), x.astype(jnp.float32))


def _joint_kernel(x3_ref, xf_ref, xm_ref, wqt_ref, bq_ref, wkt_ref, bk_ref,
                  wsel_ref, wvsel_ref, sbias_ref, cbias_ref, out_ref,
                  *, T, N, c_out2, d_k):
    C2 = c_out2
    Nq = N // C2
    scale = 1.0 / math.sqrt(d_k)

    xb = x3_ref[0]                                   # (C, T*N) channel-major slab, this batch
    C = xb.shape[0]
    KsC = wvsel_ref.shape[1]

    # ---- MultiHead Q/K projections for all timesteps at once (lane-dense matmuls) ----
    q_all = jnp.dot(wqt_ref[...], xb, preferred_element_type=jnp.float32) + bq_ref[...]
    k_all = jnp.dot(wkt_ref[...], xb, preferred_element_type=jnp.float32) + bk_ref[...]

    # ---- fused SMHSA graph-conv projection: rows (c2*T + t), lanes n ----
    x1 = jnp.zeros((C2 * T, N), jnp.float32)
    for nq in range(Nq):
        x1 = x1 + jnp.dot(xf_ref[0, :, nq * C:(nq + 1) * C], wsel_ref[nq],
                          preferred_element_type=jnp.float32)
    x1 = jnp.reshape(x1, (C2, T, N))

    # ---- fused ChebConv projection (+ bias), same interleaved output layout ----
    ch = jnp.zeros((C2 * T, N), jnp.float32)
    for nq in range(Nq):
        ch = ch + jnp.dot(xm_ref[0, :, nq * KsC:(nq + 1) * KsC], wvsel_ref[nq],
                          preferred_element_type=jnp.float32)
    ch = jnp.reshape(ch + cbias_ref[...], (C2, T, N))

    # ---- per-timestep head-summed attention, apply, bias, residual, output assembly ----
    for t in range(T):
        lo, hi = t * N, (t + 1) * N
        q_t = q_all[:, lo:hi]                        # (D, N)
        k_t = k_all[:, lo:hi]                        # (D, N)
        # sum over heads of per-head Q_h K_h^T == contraction over the full d_model dim
        s = lax.dot_general(q_t, k_t, (((0,), (0,)), ((), ())),
                            preferred_element_type=jnp.float32) * scale     # (N, N)
        s = s - jnp.max(s, axis=-1, keepdims=True)
        e = jnp.exp(s)
        # exact reciprocal (approx=True EUP variant was traded off against the 1e-3 check)
        p_attn = e * pl.reciprocal(jnp.sum(e, axis=-1, keepdims=True), approx=False)
        y = jnp.dot(x1[:, t, :], p_attn, preferred_element_type=jnp.float32)  # (C2, N)
        out_ref[0, 0:C2, lo:hi] = y + sbias_ref[...] + xb[0:C2, lo:hi]
        out_ref[0, C2:, lo:hi] = ch[:, t, :] + xb[C2:, lo:hi]


def joint_fused(x3, xf3, xm3, wqt, bq_col, wkt, bk_col, wsel, wvsel,
                sbias_row, cbias_row, *, T, N, c_out2, d_k):
    B, C, TN = x3.shape
    C2T, NqC = xf3.shape[1:]
    NqKsC = xm3.shape[2]
    Nq = N // c_out2
    KsC = wvsel.shape[1]
    kernel = functools.partial(_joint_kernel, T=T, N=N, c_out2=c_out2, d_k=d_k)
    return pl.pallas_call(
        kernel,
        out_shape=jax.ShapeDtypeStruct((B, C, TN), jnp.float32),
        grid=(B,),
        in_specs=[
            pl.BlockSpec((1, C, TN), lambda b: (b, 0, 0)),          # x (channel-major) + residual
            pl.BlockSpec((1, C2T, NqC), lambda b: (b, 0, 0)),       # rows of reshape(x, (-1, c_out))
            pl.BlockSpec((1, C2T, NqKsC), lambda b: (b, 0, 0)),     # rows of the cheb xmul matrix
            pl.BlockSpec((C, C), lambda b: (0, 0)),                 # Wq^T
            pl.BlockSpec((C, 1), lambda b: (0, 0)),                 # bq (column)
            pl.BlockSpec((C, C), lambda b: (0, 0)),                 # Wk^T
            pl.BlockSpec((C, 1), lambda b: (0, 0)),                 # bk (column)
            pl.BlockSpec((Nq, C, N), lambda b: (0, 0, 0)),          # SMHSA weight, lane-placed
            pl.BlockSpec((Nq, KsC, N), lambda b: (0, 0, 0)),        # Cheb weight, lane-placed
            pl.BlockSpec((1, N), lambda b: (0, 0)),                 # SMHSA bias row
            pl.BlockSpec((1, N), lambda b: (0, 0)),                 # Cheb bias row
        ],
        out_specs=pl.BlockSpec((1, C, TN), lambda b: (b, 0, 0)),
        compiler_params=pltpu.CompilerParams(dimension_semantics=("parallel",)),
    )(x3, xf3, xm3, wqt, bq_col, wkt, bk_col, wsel, wvsel, sbias_row, cbias_row)


# ----------------------------- forward pass -----------------------------

def joint_spatial_layer_forward(x, params):
    Ks = params['Ks']
    c_out = params['c_out']
    c_out2 = c_out // 2
    B, c_in, T, N = x.shape
    C = c_out
    h = 4
    assert C % h == 0, "d_model (= c_out) must be divisible by the number of heads (4)"
    d_k = C // h
    assert c_out == 2 * c_out2, "c_out must be even"
    assert N % c_out2 == 0, "fused layout requires n_vertex % (c_out // 2) == 0"
    Nq = N // c_out2
    TN = T * N

    # ---- Align ----
    if c_in > c_out:
        xp = jnp.reshape(jnp.transpose(x, (0, 2, 3, 1)), (-1, c_in))
        y = matmul_bias(xp, params['align_w'], params['align_b'])
        x_gc_in = jnp.transpose(jnp.reshape(y, (B, T, N, c_out)), (0, 3, 1, 2))
    elif c_in < c_out:
        x_gc_in = jnp.concatenate(
            [x, jnp.zeros((B, c_out - c_in, T, N), x.dtype)], axis=1)
    else:
        x_gc_in = x
    x_gc_in = x_gc_in.astype(jnp.float32)

    # Free (row-major) re-views of x_gc_in feeding the fused kernel.
    x3 = jnp.reshape(x_gc_in, (B, C, TN))                      # channel-major per-batch slabs
    xf3 = jnp.reshape(x_gc_in, (B, c_out2 * T, Nq * C))        # rows of torch-style reshape(-1, c_out)

    # ---- ChebConv recursion (global over the faithful (n_vertex, -1) re-view) ----
    x_nm = jnp.reshape(x_gc_in, (N, -1))
    cheb = cheb_stack(params['cheb_matrix'], x_nm, Ks)         # (Ks, N, M)
    # The only remaining real XLA copy: torch.stack(dim=2) permutation.
    x_tensor = jnp.transpose(cheb, (1, 2, 0))                  # (N, M, Ks)
    xmul = jnp.reshape(x_tensor, (-1, Ks * C))                 # faithful .view(-1, Ks*c_in)
    xm3 = jnp.reshape(xmul, (B, c_out2 * T, Nq * Ks * C))      # rows grouped by output (b, c2, t)

    # ---- tiny host-side weight / bias packings ----
    wqt = params['wq'].astype(jnp.float32).T
    wkt = params['wk'].astype(jnp.float32).T
    bq_col = jnp.reshape(params['bq'], (C, 1)).astype(jnp.float32)
    bk_col = jnp.reshape(params['bk'], (C, 1)).astype(jnp.float32)

    w_smhsa = params['smhsa_w'].astype(jnp.float32)            # (c_out, c_out2)
    w_cheb = jnp.reshape(params['cheb_w'], (Ks * C, c_out2)).astype(jnp.float32)

    def lane_select(wmat):
        # wsel[nq][:, nq*c_out2:(nq+1)*c_out2] = wmat, zeros elsewhere
        kdim = wmat.shape[0]
        out = jnp.zeros((Nq, kdim, N), jnp.float32)
        for nq in range(Nq):
            out = out.at[nq, :, nq * c_out2:(nq + 1) * c_out2].set(wmat)
        return out

    wsel = lane_select(w_smhsa)                                # (Nq, c_out, N)
    wvsel = lane_select(w_cheb)                                # (Nq, Ks*c_out, N)

    sbias_row = jnp.reshape(jnp.tile(params['smhsa_b'].astype(jnp.float32), Nq), (1, N))
    cbias_row = jnp.reshape(jnp.tile(params['cheb_b'].astype(jnp.float32), Nq), (1, N))

    out3 = joint_fused(x3, xf3, xm3, wqt, bq_col, wkt, bk_col,
                       wsel, wvsel, sbias_row, cbias_row,
                       T=T, N=N, c_out2=c_out2, d_k=d_k)
    return jnp.reshape(out3, (B, C, T, N))                     # free re-view


# ----------------------------- pure-JAX reference -----------------------------

def reference_forward(x, params):
    Ks = params['Ks']
    c_out = params['c_out']
    c_out2 = c_out // 2
    B, c_in, T, N = x.shape
    h = 4
    d_k = c_out // h

    if c_in > c_out:
        xg = (jnp.einsum('bitn,io->botn', x, params['align_w'])
              + params['align_b'][None, :, None, None])
    elif c_in < c_out:
        xg = jnp.concatenate([x, jnp.zeros((B, c_out - c_in, T, N), x.dtype)], axis=1)
    else:
        xg = x
    xg = xg.astype(jnp.float32)

    # MultiHead (explicit heads, then sum over heads)
    xp = jnp.transpose(xg, (0, 2, 3, 1))                                  # [B,T,N,D]
    q = xp @ params['wq'] + params['bq']
    k = xp @ params['wk'] + params['bk']
    qh = jnp.transpose(q.reshape(B, T, N, h, d_k), (0, 1, 3, 2, 4))
    kh = jnp.transpose(k.reshape(B, T, N, h, d_k), (0, 1, 3, 2, 4))
    scores = jnp.einsum('bthmd,bthnd->bthmn', qh, kh)
    scores = jnp.sum(scores, axis=2) / math.sqrt(d_k)
    attn = jax.nn.softmax(scores, axis=-1)                                # [B,T,N,N]

    # SMHSA
    xf = jnp.reshape(xg, (-1, c_out)) @ params['smhsa_w']
    xf4 = jnp.reshape(xf, (B, c_out2, T, N))
    xs = jnp.einsum('bjtm,btmn->bjtn', xf4, attn)
    x_gc1 = jnp.reshape(jnp.reshape(xs, (-1, c_out2)) + params['smhsa_b'],
                        (B, c_out2, T, N))

    # ChebConv
    xr = jnp.reshape(xg, (N, -1))
    xlist = [xr]
    if Ks >= 2:
        xlist.append(params['cheb_matrix'] @ xr)
        for kk in range(2, Ks):
            xlist.append(2.0 * params['cheb_matrix'] @ xlist[kk - 1] - xlist[kk - 2])
    xt = jnp.stack(xlist, axis=2)
    xm = (jnp.reshape(xt, (-1, Ks * c_out)) @ jnp.reshape(params['cheb_w'], (Ks * c_out, c_out2))
          + params['cheb_b'])
    x_gc2 = jnp.reshape(xm, (B, c_out2, T, N))

    return jnp.concatenate([x_gc1, x_gc2], axis=1) + xg


# ----------------------------- main -----------------------------

if __name__ == "__main__":
    B, c_in, T, N = 2, 4, 8, 16         # batch, in-channels, timesteps, n_vertex
    c_out = 8                           # Joint layer output channels (c_out2 = 4, d_model = 8)
    c_out2 = c_out // 2
    Ks = 3

    key = jax.random.PRNGKey(0)
    keys = jax.random.split(key, 12)

    params = {
        'Ks': Ks,
        'c_out': c_out,
        # Align 1x1 conv params (only used when c_in > c_out)
        'align_w': 0.3 * jax.random.normal(keys[0], (c_in, c_out), jnp.float32),
        'align_b': 0.1 * jax.random.normal(keys[1], (c_out,), jnp.float32),
        # SMHSA graph-conv weight / bias
        'smhsa_w': 0.3 * jax.random.normal(keys[2], (c_out, c_out2), jnp.float32),
        'smhsa_b': 0.1 * jax.random.normal(keys[3], (c_out2,), jnp.float32),
        # MultiHead linears (query, key), d_model = c_out
        'wq': 0.3 * jax.random.normal(keys[4], (c_out, c_out), jnp.float32),
        'bq': 0.1 * jax.random.normal(keys[5], (c_out,), jnp.float32),
        'wk': 0.3 * jax.random.normal(keys[6], (c_out, c_out), jnp.float32),
        'bk': 0.1 * jax.random.normal(keys[7], (c_out,), jnp.float32),
        # ChebConv weight / bias and the graph convolution matrix
        'cheb_w': 0.3 * jax.random.normal(keys[8], (Ks, c_out, c_out2), jnp.float32),
        'cheb_b': 0.1 * jax.random.normal(keys[9], (c_out2,), jnp.float32),
        'cheb_matrix': 0.2 * jax.random.normal(keys[10], (N, N), jnp.float32),
    }

    x = jax.random.normal(keys[11], (B, c_in, T, N), jnp.float32)

    # TODO(synk): nn.Dropout(p=0.1) on the attention matrix is train-mode stochastic;
    # implemented with eval semantics (identity).
    out = joint_spatial_layer_forward(x, params)
    out = jax.block_until_ready(out)

    ref = jax.block_until_ready(reference_forward(x, params))
    assert out.shape == (B, c_out, T, N), out.shape
    max_err = float(jnp.max(jnp.abs(out - ref)))
    assert max_err < 1e-3, f"max abs error {max_err}"

    print("KERNEL_OK")
</pallas_src>

<mosaic_0001>
module attributes {stable_mosaic.version = 11 : i64} {
  func.func @_cheb_kernel(%arg0: i32, %arg1: memref<16x16xf32, #tpu.memory_space<vmem>>, %arg2: memref<16x128xf32, #tpu.memory_space<vmem>>, %arg3: memref<3x16x128xf32, #tpu.memory_space<vmem>>) attributes {dimension_semantics = [#tpu.dimension_semantics<parallel>], iteration_bounds = array<i64: 1>, scalar_prefetch = 0 : i64, scratch_operands = 0 : i64, tpu.core_type = #tpu.core_type<tc>, window_params = [{pipeline_mode = #tpu.pipeline_mode<synchronous>, transform_indices = @transform_0, window_bounds = array<i64: 16, 16>}, {transform_indices = @transform_1, window_bounds = array<i64: 16, 128>}, {transform_indices = @transform_2, window_bounds = array<i64: 3, 16, 128>}]} {
    %c0 = arith.constant 0 : index
    %c0_0 = arith.constant 0 : index
    %0 = vector.load %arg1[%c0, %c0_0] : memref<16x16xf32, #tpu.memory_space<vmem>>, vector<16x16xf32>
    %c0_1 = arith.constant 0 : index
    %c0_2 = arith.constant 0 : index
    %1 = vector.load %arg2[%c0_1, %c0_2] : memref<16x128xf32, #tpu.memory_space<vmem>>, vector<16x128xf32>
    %c0_3 = arith.constant 0 : index
    %c0_4 = arith.constant 0 : index
    %c0_5 = arith.constant 0 : index
    %2 = vector.load %arg3[%c0_3, %c0_4, %c0_5] : memref<3x16x128xf32, #tpu.memory_space<vmem>>, vector<1x16x128xf32>
    %3 = vector.shape_cast %2 : vector<1x16x128xf32> to vector<16x128xf32>
    %4 = vector.shape_cast %1 : vector<16x128xf32> to vector<1x16x128xf32>
    tpu.vector_store %arg3[%c0_3, %c0_4, %c0_5], %4 {strides = array<i32>} : memref<3x16x128xf32, #tpu.memory_space<vmem>>, vector<1x16x128xf32>,
    %cst = arith.constant dense<0.000000e+00> : vector<16x128xf32>
    %5 = tpu.matmul %0, %1, %cst {dimension_numbers = #tpu.dot_dimension_numbers<[1], [0], [0], [1], [0, 0, 1, 1], [], []>} : vector<16x16xf32>, vector<16x128xf32>, vector<16x128xf32> -> vector<16x128xf32>
    %c1 = arith.constant 1 : index
    %c0_6 = arith.constant 0 : index
    %c0_7 = arith.constant 0 : index
    %6 = vector.load %arg3[%c1, %c0_6, %c0_7] : memref<3x16x128xf32, #tpu.memory_space<vmem>>, vector<1x16x128xf32>
    %7 = vector.shape_cast %6 : vector<1x16x128xf32> to vector<16x128xf32>
    %8 = vector.shape_cast %5 : vector<16x128xf32> to vector<1x16x128xf32>
    tpu.vector_store %arg3[%c1, %c0_6, %c0_7], %8 {strides = array<i32>} : memref<3x16x128xf32, #tpu.memory_space<vmem>>, vector<1x16x128xf32>,
    %cst_8 = arith.constant dense<0.000000e+00> : vector<16x128xf32>
    %9 = tpu.matmul %0, %5, %cst_8 {dimension_numbers = #tpu.dot_dimension_numbers<[1], [0], [0], [1], [0, 0, 1, 1], [], []>} : vector<16x16xf32>, vector<16x128xf32>, vector<16x128xf32> -> vector<16x128xf32>
    %cst_9 = arith.constant 2.000000e+00 : f32
    %10 = vector.broadcast %cst_9 : f32 to vector<16x128xf32>
    %11 = arith.mulf %10, %9 : vector<16x128xf32>
    %12 = arith.subf %11, %1 : vector<16x128xf32>
    %c2 = arith.constant 2 : index
    %c0_10 = arith.constant 0 : index
    %c0_11 = arith.constant 0 : index
    %13 = vector.load %arg3[%c2, %c0_10, %c0_11] : memref<3x16x128xf32, #tpu.memory_space<vmem>>, vector<1x16x128xf32>
    %14 = vector.shape_cast %13 : vector<1x16x128xf32> to vector<16x128xf32>
    %15 = vector.shape_cast %12 : vector<16x128xf32> to vector<1x16x128xf32>
    tpu.vector_store %arg3[%c2, %c0_10, %c0_11], %15 {strides = array<i32>} : memref<3x16x128xf32, #tpu.memory_space<vmem>>, vector<1x16x128xf32>,
    return
  }
  func.func @transform_0(%arg0: i32) -> (i32, i32) {
    %c0_i32 = arith.constant 0 : i32
    %c0_i32_0 = arith.constant 0 : i32
    %c0_i32_1 = arith.constant 0 : i32
    return %c0_i32, %c0_i32_0 : i32, i32
  }
  func.func @transform_1(%arg0: i32) -> (i32, i32) {
    %c0_i32 = arith.constant 0 : i32
    %c0_i32_0 = arith.constant 0 : i32
    return %c0_i32, %arg0 : i32, i32
  }
  func.func @transform_2(%arg0: i32) -> (i32, i32, i32) {
    %c0_i32 = arith.constant 0 : i32
    %c0_i32_0 = arith.constant 0 : i32
    %c0_i32_1 = arith.constant 0 : i32
    return %c0_i32, %c0_i32_0, %arg0 : i32, i32, i32
  }
}

</mosaic_0001>

<bundles_post_ra>
// kernel: tpu_custom_call.1
= control target key start
LH: loop header
LB: loop body
LE: loop exit
PB: predicated region body
PF: predicated region fallthrough
CT: control target
= control target key end

     0   :  { %7 = vsyncpa [#allocation3], 0  ;;  %s411_s0 = inlined_call_operand.hbm [shape: f32[16,16], index: 0, kind: input, shape index: {}]   ;;  %s412_s1 = inlined_call_operand.hbm [shape: f32[16,128], index: 1, kind: input, shape index: {}]   ;;  %s413_s2 = inlined_call_operand.hbm [shape: f32[3,16,128], index: 2, kind: output, shape index: {}]  }
   0x1   :  { %8 = vsyncpa [#allocation6], 0 }
   0x2   :  { %9 = vsyncpa [#allocation4], 0  ;;  %s342_s9 = smov [#allocation2]   ;;  %s270_s13 = scalar_lea.hbm %s411_s0, 256 }
   0x3   :  { %s15_s10 = sshll.u32 %s342_s9, 4  ;;  %p271_p0 = scmp.ne.s32.totalorder %s411_s0, %s270_s13  ;;  %s16_s10 = int_to_ptr.vmem [resolvable:$true] %s15_s10 }
   0x4   :  { %p274_p1 = scmp.lt.u32.totalorder %s270_s13, %s411_s0 }
   0x6   :  { %p276_p2 = pnand %p274_p1, %p271_p0 }
   0x8   :  { %279 = shalt.err (!%p276_p2)
}
   0x9   :  { %s280_s18 = scalar_lea.vmem %s16_s10, 256  ;;  %p285_p4 = scmp.lt.s32.totalorder %s16_s10, %s16_s10 }
   0xa   :  { %p281_p3 = scmp.ne.s32.totalorder %s16_s10, %s280_s18  ;;  %p286_p5 = scmp.lt.s32.totalorder %s280_s18, %s280_s18 }
   0xc   :  { %p287_p6 = por %p286_p5, %p285_p4 }
   0xe   :  { %p288_p7 = pnand %p287_p6, %p281_p3 }
  0x10   :  { %291 = shalt.err (!%p288_p7)
}
  0x11   :  { %s343_s19 = smov 128   ;;  %s344_s20 = smov 8  }
  0x12   :  { %21 = dma.hbm_to_vmem [thread:$0]  %s411_s0, 256, %s16_s10, [#allocation3], %s343_s19, %s343_s19, %s344_s20  }
  0x13   :  { %s345_s23 = smov [#allocation5]   ;;  %s292_s27 = scalar_lea.hbm %s412_s1, 256 }
  0x14   :  { %s27_s24 = sshll.u32 %s345_s23, 4  ;;  %p293_p8 = scmp.ne.s32.totalorder %s412_s1, %s292_s27  ;;  %s28_s24 = int_to_ptr.vmem [resolvable:$true] %s27_s24 }
  0x15   :  { %p296_p9 = scmp.lt.u32.totalorder %s292_s27, %s412_s1 }
  0x17   :  { %p298_p10 = pnand %p296_p9, %p293_p8 }
  0x19   :  { %301 = shalt.err (!%p298_p10)
}
  0x1a   :  { %s302_s4 = scalar_lea.vmem %s28_s24, 256  ;;  %p307_p12 = scmp.lt.s32.totalorder %s28_s24, %s28_s24 }
  0x1b   :  { %p303_p11 = scmp.ne.s32.totalorder %s28_s24, %s302_s4  ;;  %p308_p13 = scmp.lt.s32.totalorder %s302_s4, %s302_s4 }
  0x1d   :  { %p309_p0 = por %p308_p13, %p307_p12 }
  0x1f   :  { %p310_p1 = pnand %p309_p0, %p303_p11 }
  0x21   :  { %313 = shalt.err (!%p310_p1)
}
  0x22   :  { %33 = dma.hbm_to_vmem [thread:$0]  %s412_s1, 256, %s28_s24, [#allocation6], %s343_s19, %s343_s19, %s344_s20  }
  0x23   :  { %336 = dma.done.wait [#allocation3], 256  }
  0x24   :  { %337 = vsyncadd [#allocation3], 4294967040 }
  0x25   :  { %338 = dma.done.wait [#allocation6], 256  }
  0x26   :  { %339 = vsyncadd [#allocation6], 4294967040  ;;  %vm46_vm0 = vcmask 130048   ;;  %v42_v0 = vld [vmem:[#allocation5] sm:$0xff]  ;;  %v43_v1 = vld [vmem:[#allocation5 + $0x8] sm:$0xff]  ;;  %s346_s1 = smov [#allocation7]  }
  0x27   :  { %v40_v2 = vld [vmem:[#allocation2] sm:$0xff]  ;;  %44 = vst [vmem:[#allocation7] sm:$0xff] %v42_v0  ;;  %45 = vst [vmem:[#allocation7 + $0x8] sm:$0xff] %v43_v1  ;;  %v257_v3 = vpack.c.bf16 %v43_v1, %v42_v0  ;;  %v41_v4 = vld [vmem:[#allocation2 + $0x8] sm:$0xff]  ;;  %s218_s6 = sshll.u32 %s346_s1, 4  ;;  %s219_s6 = int_to_ptr.vmem [resolvable:$true] %s218_s6 }
  0x28   :  { %247 = vmatprep.mubr.msk.f32.mxu0 %vm46_vm0, %v40_v2  ;;  %254 = vmatprep.mubr.msk.f32.mxu1 %vm46_vm0, %v40_v2  ;;  %s314_s7 = scalar_lea.vmem %s219_s6, 768  ;;  %p319_p3 = scmp.lt.s32.totalorder %s219_s6, %s219_s6 }
  0x29   :  { %258 = vmatprep.subr.bf16.mxu0 %v257_v3  ;;  %p315_p2 = scmp.ne.s32.totalorder %s219_s6, %s314_s7  ;;  %p320_p4 = scmp.lt.s32.totalorder %s314_s7, %s314_s7 }
  0x2a   :  { %260 = vmatpush3.bf16.msra.mxu0 %v257_v3 }
  0x2b   :  { %p321_p5 = por %p320_p4, %p319_p3 }
  0x2d   :  { %248 = vmatmul.mubr.msk.f32.vlgmr.msra.gmra.mrb[0].mxu0 %vm46_vm0, %v41_v4  ;;  %p322_p6 = pnand %p321_p5, %p315_p2 }
 0x100   :  { %v249_v5 = vpop.f32.mrb[0].mxu0 }
 0x101   :  { %130 = vst [vmem:[#allocation7 + $0x18] sm:$0xff] %v249_v5  ;;  %v119_v6 = vpop.f32.mrb[1].mxu0 }
 0x102   :  { %129 = vst [vmem:[#allocation7 + $0x10] sm:$0xff] %v119_v6  ;;  %v261_v7 = vpack.c.bf16 %v249_v5, %v119_v6 }
 0x104   :  { %262 = vmatprep.subr.bf16.mxu1 %v261_v7 }
 0x105   :  { %264 = vmatpush3.bf16.msra.mxu1 %v261_v7 }
 0x108   :  { %255 = vmatmul.mubr.msk.f32.vlgmr.msra.gmra.mrb[0].mxu1 %vm46_vm0, %v41_v4 }
 0x1db   :  { %v256_v8 = vpop.f32.mrb[0].mxu1 }
 0x1dc   :  { %v207_v9 = vmul.f32 2.0, %v256_v8  ;;  %v197_v10 = vpop.f32.mrb[1].mxu1 }
 0x1dd   :  { %v206_v11 = vmul.f32 2.0, %v197_v10 }
 0x1de   :  { %v209_v12 = vsub.f32 %v207_v9, %v43_v1 }
 0x1df   :  { %v208_v13 = vsub.f32 %v206_v11, %v42_v0 }
 0x1e0   :  { %212 = vst [vmem:[#allocation7 + $0x28] sm:$0xff] %v209_v12 }
 0x1e1   :  { %211 = vst [vmem:[#allocation7 + $0x20] sm:$0xff] %v208_v13 }
 0x1e2   :  { %325 = shalt.err (!%p322_p6)
}
 0x1e3   :  { %s326_s10 = scalar_lea.hbm %s413_s2, 768 }
 0x1e4   :  { %p327_p7 = scmp.ne.s32.totalorder %s413_s2, %s326_s10  ;;  %p330_p8 = scmp.lt.u32.totalorder %s326_s10, %s413_s2 }
 0x1e6   :  { %p332_p9 = pnand %p330_p8, %p327_p7 }
 0x1e8   :  { %335 = shalt.err (!%p332_p9)
}
 0x1e9   :  { %224 = dma.vmem_to_hbm [thread:$0]  %s219_s6, 768, %s413_s2, [#allocation4], %s343_s19, %s343_s19, %s344_s20  }
 0x1ea   :  { %340 = dma.done.wait [#allocation4], 768  }
 0x1eb   :  { %341 = vsyncadd [#allocation4], 4294966528 }
 0x1ec   :  { %228 = vsyncpa [#allocation3], 1 }
 0x1ed   :  { %229 = vsyncpa [#allocation6], 1 }
 0x1ee   :  { %230 = vsyncpa [#allocation4], 1 }

</bundles_post_ra>
